<compile_context>
chip_gen: v6e
topology: v6e:2x2x1
jax: 0.10.0
libtpu: 0.0.40
codegen_flags: <defaults>
</compile_context>

<pallas_src>
import functools

import jax
import jax.numpy as jnp
from jax.experimental import pallas as pl
from jax.experimental.pallas import tpu as pltpu


# ---------------------------------------------------------------------------
# Generation-aware configuration
# ---------------------------------------------------------------------------

def _vmem_limit_bytes():
    """Scoped-VMEM limit: ~70% of physical VMEM, clamped to [32, 96] MiB."""
    cap = 64 * 1024 * 1024          # v7x per-TC size; safe lower bound everywhere
    try:
        info = pltpu.get_tpu_info()
        cap_attr = getattr(info, "vmem_capacity_bytes", None)
        if cap_attr:
            cap = int(cap_attr)
    except Exception:
        pass
    return max(32 * 1024 * 1024, min(int(cap * 7 // 10), 96 * 1024 * 1024))


def _pick_tiles(n, c, hw, itemsize, vmem_limit):
    """Choose (Nb, TM, lane_chunks) for a (Nb, C, TM) block of the (N, C, HW) slab.

    Tiles are sized by BYTES (~1-4 MiB) rather than a fixed lane count so that
    small-C inputs still issue large DMAs; batch samples are folded into the
    block (Nb > 1) when one sample's (C, TM) row is below the byte target.
    """
    target = max(512 * 1024, min(4 * 1024 * 1024, vmem_limit // 12))
    row_bytes = c * itemsize                       # bytes per lane column

    if hw % 128 != 0 or hw * row_bytes <= target:
        tm = hw                                    # full row: always a legal block dim
    else:
        # Largest multiple of 128 dividing HW that fits the byte target.
        chunks = max(1, min(hw // 128, target // (128 * row_bytes)))
        while chunks > 1 and hw % (chunks * 128) != 0:
            chunks -= 1
        tm = chunks * 128

    # Bound the in-kernel static unroll of the 128-lane chunk accumulation.
    max_unroll = 64
    lane_chunks = tm // 128 if tm % 128 == 0 else 0
    if lane_chunks > max_unroll:
        lane_chunks = 0          # fall back to one cross-lane reduce per tile

    # Fold batch samples into the block to amortize per-grid-step overhead.
    tile_row_bytes = c * tm * itemsize
    nb = max(1, min(n, target // max(1, tile_row_bytes)))
    while n % nb != 0:
        nb -= 1
    return nb, tm, lane_chunks


# ---------------------------------------------------------------------------
# Kernels
# ---------------------------------------------------------------------------

def _fused_kernel(x_ref, w_ref, b_ref, o_ref, mean_ref, var_ref,
                  *, inv_m, inv_m1, eps):
    """Single-pass BN (whole slab resident in VMEM): stats + normalize."""
    x = x_ref[...].astype(jnp.float32)                     # (N, C, HW)
    xs = jnp.sum(x, axis=0)                                # (C, HW)  VPU
    xq = jnp.sum(x * x, axis=0)                            # (C, HW)
    s = jnp.sum(xs, axis=-1, keepdims=True)                # (C, 1)
    ssq = jnp.sum(xq, axis=-1, keepdims=True)              # (C, 1)

    mean = s * inv_m
    # Unbiased variance; clamp absorbs f32 cancellation of sumsq - sum*mean.
    var = jnp.maximum((ssq - s * mean) * inv_m1, 0.0)
    inv_std = jax.lax.rsqrt(var + eps)

    w = w_ref[...].astype(jnp.float32)                     # (C, 1)
    b = b_ref[...].astype(jnp.float32)                     # (C, 1)
    scale = w * inv_std                                    # (C, 1)
    shift = b - mean * scale                               # (C, 1)

    o_ref[...] = (x * scale[None, :, :] + shift[None, :, :]).astype(o_ref.dtype)
    mean_ref[...] = mean
    var_ref[...] = var


def _stats_kernel(x_ref, psum_ref, psumsq_ref, *, lane_chunks):
    """Pass 1: per-channel partial sum / sum-of-squares.

    x_ref: (Nb, C, TM) block.
    psum_ref / psumsq_ref: (1, C, LANES) f32 partials, one row per leading grid
    index (batch-chunk), resident across the HW-tile axis.
    """
    t = pl.program_id(1)

    @pl.when(t == 0)
    def _init():
        psum_ref[...] = jnp.zeros_like(psum_ref)
        psumsq_ref[...] = jnp.zeros_like(psumsq_ref)

    x = x_ref[...].astype(jnp.float32)                     # (Nb, C, TM)
    xs = jnp.sum(x, axis=0)                                # (C, TM)  VPU adds over batch
    xq = jnp.sum(x * x, axis=0)                            # (C, TM)

    if lane_chunks > 0:
        # Fold TM lanes onto 128 lanes: static slices at 128-lane boundaries are
        # free vreg selects; adds run on the VPU (no per-tile cross-lane reduce,
        # and 128 partial bins improve f32 accumulation).
        ps = xs[:, 0:128]
        pq = xq[:, 0:128]
        for j in range(1, lane_chunks):
            ps = ps + xs[:, j * 128:(j + 1) * 128]
            pq = pq + xq[:, j * 128:(j + 1) * 128]
    else:
        # TM not a multiple of 128 (or too many chunks to unroll): single
        # cross-lane reduce per tile into a width-1 partial.
        ps = jnp.sum(xs, axis=-1, keepdims=True)           # (C, 1)
        pq = jnp.sum(xq, axis=-1, keepdims=True)           # (C, 1)

    psum_ref[...] += ps[None, :, :]
    psumsq_ref[...] += pq[None, :, :]


def _normalize_kernel(x_ref, scale_ref, shift_ref, o_ref):
    """Pass 2: out = x * scale + shift  (per-channel affine, lanes = HW)."""
    x = x_ref[...].astype(jnp.float32)                     # (Nb, C, TM)
    scale = scale_ref[...][None, :, :]                     # (1, C, 1)
    shift = shift_ref[...][None, :, :]                     # (1, C, 1)
    o_ref[...] = (x * scale + shift).astype(o_ref.dtype)


# ---------------------------------------------------------------------------
# Wrapper
# ---------------------------------------------------------------------------

def sync_batch_norm_2d(x, weight, bias, running_mean, running_var,
                       *, eps=1e-5, momentum=0.9, training=True,
                       _force_two_pass=False):
    """Forward pass of SyncBatchNorm2d (single device, world_size == 1). x is NCHW."""
    N, C, H, W = x.shape
    HW = H * W
    M = N * HW
    itemsize = jnp.dtype(x.dtype).itemsize
    vmem_limit = _vmem_limit_bytes()

    # Free reshape (no data movement): NCHW -> (N, C, HW).
    x3 = x.reshape(N, C, HW)

    inv_m = 1.0 / float(M)
    inv_m1 = 1.0 / float(max(M - 1, 1))

    # ---- Fused single-pass path (training, whole slab fits in VMEM) ----
    slab_in = N * C * HW * itemsize
    slab_f32 = N * C * HW * 4
    fused_live = 2 * slab_in + 3 * slab_f32      # in + out + f32 temporaries
    use_fused = training and (not _force_two_pass) and fused_live <= (vmem_limit * 4) // 5

    if use_fused:
        w_c1 = weight.astype(jnp.float32).reshape(C, 1)
        b_c1 = bias.astype(jnp.float32).reshape(C, 1)
        fused = functools.partial(_fused_kernel, inv_m=inv_m, inv_m1=inv_m1,
                                  eps=float(eps))
        out3, mean_c1, var_c1 = pl.pallas_call(
            fused,
            out_shape=(jax.ShapeDtypeStruct((N, C, HW), x.dtype),
                       jax.ShapeDtypeStruct((C, 1), jnp.float32),
                       jax.ShapeDtypeStruct((C, 1), jnp.float32)),
            compiler_params=pltpu.CompilerParams(vmem_limit_bytes=vmem_limit),
        )(x3, w_c1, b_c1)
        mean_bn = mean_c1.reshape(C)
        var_bn = var_c1.reshape(C)
        new_running_mean = momentum * running_mean + (1.0 - momentum) * mean_bn
        new_running_var = momentum * running_var + (1.0 - momentum) * var_bn
        return out3.reshape(N, C, H, W), new_running_mean, new_running_var

    # ---- Tiled two-pass path ----
    nb, tm, lane_chunks = _pick_tiles(N, C, HW, itemsize, vmem_limit)
    lanes = 128 if lane_chunks > 0 else 1
    g0 = N // nb
    g1 = HW // tm
    grid = (g0, g1)

    if training:
        stats = functools.partial(_stats_kernel, lane_chunks=lane_chunks)
        psum, psumsq = pl.pallas_call(
            stats,
            grid=grid,
            in_specs=[pl.BlockSpec((nb, C, tm), lambda g, t: (g, 0, t))],
            out_specs=(pl.BlockSpec((1, C, lanes), lambda g, t: (g, 0, 0)),
                       pl.BlockSpec((1, C, lanes), lambda g, t: (g, 0, 0))),
            out_shape=(jax.ShapeDtypeStruct((g0, C, lanes), jnp.float32),
                       jax.ShapeDtypeStruct((g0, C, lanes), jnp.float32)),
            compiler_params=pltpu.CompilerParams(
                dimension_semantics=("parallel", "arbitrary"),
                vmem_limit_bytes=vmem_limit),
        )(x3)
        # Tiny final combine (g0 * C * lanes elements) in plain JAX.
        s = jnp.sum(psum, axis=(0, 2))                     # (C,)
        ssq = jnp.sum(psumsq, axis=(0, 2))                 # (C,)
        mean_bn = s * inv_m
        var_bn = jnp.maximum((ssq - s * mean_bn) * inv_m1, 0.0)
        new_running_mean = momentum * running_mean + (1.0 - momentum) * mean_bn
        new_running_var = momentum * running_var + (1.0 - momentum) * var_bn
    else:
        # Eval mode: normalize with the running buffers; buffers unchanged.
        mean_bn = running_mean.astype(jnp.float32)
        var_bn = running_var.astype(jnp.float32)
        new_running_mean, new_running_var = running_mean, running_var

    # Fold per-channel normalization + affine into scale/shift (C-sized; tiny).
    inv_std = jax.lax.rsqrt(var_bn.astype(jnp.float32) + float(eps))
    w32 = weight.astype(jnp.float32)
    scale = (w32 * inv_std).reshape(C, 1)
    shift = (bias.astype(jnp.float32)
             - mean_bn.astype(jnp.float32) * w32 * inv_std).reshape(C, 1)

    out3 = pl.pallas_call(
        _normalize_kernel,
        grid=grid,
        in_specs=[pl.BlockSpec((nb, C, tm), lambda g, t: (g, 0, t)),
                  pl.BlockSpec((C, 1), lambda g, t: (0, 0)),
                  pl.BlockSpec((C, 1), lambda g, t: (0, 0))],
        out_specs=pl.BlockSpec((nb, C, tm), lambda g, t: (g, 0, t)),
        out_shape=jax.ShapeDtypeStruct((N, C, HW), x.dtype),
        compiler_params=pltpu.CompilerParams(
            dimension_semantics=("parallel", "parallel"),
            vmem_limit_bytes=vmem_limit),
    )(x3, scale, shift)

    return out3.reshape(N, C, H, W), new_running_mean, new_running_var


# ---------------------------------------------------------------------------
# Reference (matches the PyTorch module: unbiased variance in normalization)
# ---------------------------------------------------------------------------

def _reference(x, weight, bias, eps):
    N, C, H, W = x.shape
    M = N * H * W
    xc = jnp.transpose(x, (1, 0, 2, 3)).reshape(C, M)
    mean = jnp.mean(xc, axis=1)
    var = jnp.sum((xc - mean[:, None]) ** 2, axis=1) / (M - 1)  # unbiased
    x_hat = (x - mean[None, :, None, None]) / jnp.sqrt(var[None, :, None, None] + eps)
    return x_hat * weight[None, :, None, None] + bias[None, :, None, None], mean, var


if __name__ == "__main__":
    key = jax.random.PRNGKey(0)
    N, C, H, W = 2, 4, 16, 16

    x = jax.random.normal(key, (N, C, H, W), dtype=jnp.float32)

    # Deterministic parameter init, mirroring reset_parameters():
    #   weight = 1, bias = 0, running_mean = 0, running_var = 0
    weight = jnp.ones((C,), dtype=jnp.float32)
    bias = jnp.zeros((C,), dtype=jnp.float32)
    running_mean = jnp.zeros((C,), dtype=jnp.float32)
    running_var = jnp.zeros((C,), dtype=jnp.float32)

    momentum = 0.9
    eps = 1e-5

    ref_out, ref_mean, ref_var = _reference(x, weight, bias, eps)
    ref_rm = momentum * running_mean + (1.0 - momentum) * ref_mean
    ref_rv = momentum * running_var + (1.0 - momentum) * ref_var

    # Training, fused single-pass path (slab fits in VMEM at this shape).
    out, new_rm, new_rv = sync_batch_norm_2d(
        x, weight, bias, running_mean, running_var,
        eps=eps, momentum=momentum, training=True)
    out = jax.block_until_ready(out)
    assert out.shape == (N, C, H, W)
    assert jnp.allclose(out, ref_out, atol=1e-4, rtol=1e-4), "fused output mismatch"
    assert jnp.allclose(new_rm, ref_rm, atol=1e-4, rtol=1e-4), "fused running_mean mismatch"
    assert jnp.allclose(new_rv, ref_rv, atol=1e-4, rtol=1e-4), "fused running_var mismatch"

    # Training, forced tiled two-pass path (exercises stats + normalize kernels).
    out2, rm2, rv2 = sync_batch_norm_2d(
        x, weight, bias, running_mean, running_var,
        eps=eps, momentum=momentum, training=True, _force_two_pass=True)
    out2 = jax.block_until_ready(out2)
    assert jnp.allclose(out2, ref_out, atol=1e-4, rtol=1e-4), "two-pass output mismatch"
    assert jnp.allclose(rm2, ref_rm, atol=1e-4, rtol=1e-4), "two-pass running_mean mismatch"
    assert jnp.allclose(rv2, ref_rv, atol=1e-4, rtol=1e-4), "two-pass running_var mismatch"

    # Eval mode (normalizes with running stats; buffers unchanged).
    out_eval, rm_e, rv_e = sync_batch_norm_2d(
        x, weight, bias, new_rm, new_rv,
        eps=eps, momentum=momentum, training=False)
    out_eval = jax.block_until_ready(out_eval)
    ref_eval = ((x - new_rm[None, :, None, None])
                / jnp.sqrt(new_rv[None, :, None, None] + eps)
                * weight[None, :, None, None] + bias[None, :, None, None])
    assert out_eval.shape == (N, C, H, W)
    assert jnp.allclose(out_eval, ref_eval, atol=1e-4, rtol=1e-4), "eval output mismatch"
    assert jnp.allclose(rm_e, new_rm) and jnp.allclose(rv_e, new_rv)

    print("KERNEL_OK")
</pallas_src>

<mosaic_0001>
module attributes {stable_mosaic.version = 11 : i64} {
  func.func @_fused_kernel(%arg0: memref<2x4x256xf32, #tpu.memory_space<vmem>>, %arg1: memref<4x1xf32, #tpu.memory_space<vmem>>, %arg2: memref<4x1xf32, #tpu.memory_space<vmem>>, %arg3: memref<2x4x256xf32, #tpu.memory_space<vmem>>, %arg4: memref<4x1xf32, #tpu.memory_space<vmem>>, %arg5: memref<4x1xf32, #tpu.memory_space<vmem>>) attributes {dimension_semantics = [], scalar_prefetch = 0 : i64, scratch_operands = 0 : i64, tpu.core_type = #tpu.core_type<tc>} {
    %c0 = arith.constant 0 : index
    %c0_0 = arith.constant 0 : index
    %c0_1 = arith.constant 0 : index
    %0 = vector.load %arg0[%c0, %c0_0, %c0_1] : memref<2x4x256xf32, #tpu.memory_space<vmem>>, vector<2x4x256xf32>
    %cst = arith.constant dense<0.000000e+00> : vector<4x256xf32>
    %1 = vector.multi_reduction <add>, %0, %cst [0] : vector<2x4x256xf32> to vector<4x256xf32>
    %2 = arith.mulf %0, %0 : vector<2x4x256xf32>
    %cst_2 = arith.constant dense<0.000000e+00> : vector<4x256xf32>
    %3 = vector.multi_reduction <add>, %2, %cst_2 [0] : vector<2x4x256xf32> to vector<4x256xf32>
    %cst_3 = arith.constant dense<0.000000e+00> : vector<4xf32>
    %4 = vector.multi_reduction <add>, %1, %cst_3 [1] : vector<4x256xf32> to vector<4xf32>
    %5 = vector.shape_cast %4 : vector<4xf32> to vector<4x1xf32>
    %cst_4 = arith.constant dense<0.000000e+00> : vector<4xf32>
    %6 = vector.multi_reduction <add>, %3, %cst_4 [1] : vector<4x256xf32> to vector<4xf32>
    %7 = vector.shape_cast %6 : vector<4xf32> to vector<4x1xf32>
    %cst_5 = arith.constant 0.001953125 : f32
    %8 = vector.broadcast %cst_5 : f32 to vector<4x1xf32>
    %9 = arith.mulf %5, %8 : vector<4x1xf32>
    %10 = arith.mulf %5, %9 : vector<4x1xf32>
    %11 = arith.subf %7, %10 : vector<4x1xf32>
    %cst_6 = arith.constant 0.00195694715 : f32
    %12 = vector.broadcast %cst_6 : f32 to vector<4x1xf32>
    %13 = arith.mulf %11, %12 : vector<4x1xf32>
    %cst_7 = arith.constant 0.000000e+00 : f32
    %14 = vector.broadcast %cst_7 : f32 to vector<4x1xf32>
    %15 = arith.maximumf %13, %14 : vector<4x1xf32>
    %cst_8 = arith.constant 9.99999974E-6 : f32
    %16 = vector.broadcast %cst_8 : f32 to vector<4x1xf32>
    %17 = arith.addf %15, %16 : vector<4x1xf32>
    %18 = math.rsqrt %17 : vector<4x1xf32>
    %c0_9 = arith.constant 0 : index
    %c0_10 = arith.constant 0 : index
    %19 = vector.load %arg1[%c0_9, %c0_10] : memref<4x1xf32, #tpu.memory_space<vmem>>, vector<4x1xf32>
    %c0_11 = arith.constant 0 : index
    %c0_12 = arith.constant 0 : index
    %20 = vector.load %arg2[%c0_11, %c0_12] : memref<4x1xf32, #tpu.memory_space<vmem>>, vector<4x1xf32>
    %21 = arith.mulf %19, %18 : vector<4x1xf32>
    %22 = arith.mulf %9, %21 : vector<4x1xf32>
    %23 = arith.subf %20, %22 : vector<4x1xf32>
    %24 = vector.shape_cast %21 : vector<4x1xf32> to vector<1x4x1xf32>
    %25 = vector.broadcast %24 : vector<1x4x1xf32> to vector<2x4x256xf32>
    %26 = arith.mulf %0, %25 : vector<2x4x256xf32>
    %27 = vector.shape_cast %23 : vector<4x1xf32> to vector<1x4x1xf32>
    %28 = vector.broadcast %27 : vector<1x4x1xf32> to vector<2x4x256xf32>
    %29 = arith.addf %26, %28 : vector<2x4x256xf32>
    %c0_13 = arith.constant 0 : index
    %c0_14 = arith.constant 0 : index
    %c0_15 = arith.constant 0 : index
    %30 = vector.load %arg3[%c0_13, %c0_14, %c0_15] : memref<2x4x256xf32, #tpu.memory_space<vmem>>, vector<2x4x256xf32>
    tpu.vector_store %arg3[%c0_13, %c0_14, %c0_15], %29 {strides = array<i32>} : memref<2x4x256xf32, #tpu.memory_space<vmem>>, vector<2x4x256xf32>,
    %c0_16 = arith.constant 0 : index
    %c0_17 = arith.constant 0 : index
    %31 = vector.load %arg4[%c0_16, %c0_17] : memref<4x1xf32, #tpu.memory_space<vmem>>, vector<4x1xf32>
    tpu.vector_store %arg4[%c0_16, %c0_17], %9 {strides = array<i32>} : memref<4x1xf32, #tpu.memory_space<vmem>>, vector<4x1xf32>,
    %c0_18 = arith.constant 0 : index
    %c0_19 = arith.constant 0 : index
    %32 = vector.load %arg5[%c0_18, %c0_19] : memref<4x1xf32, #tpu.memory_space<vmem>>, vector<4x1xf32>
    tpu.vector_store %arg5[%c0_18, %c0_19], %15 {strides = array<i32>} : memref<4x1xf32, #tpu.memory_space<vmem>>, vector<4x1xf32>,
    return
  }
}

</mosaic_0001>

<bundles_post_ra>
// kernel: tpu_custom_call.1
= control target key start
LH: loop header
LB: loop body
LE: loop exit
PB: predicated region body
PF: predicated region fallthrough
CT: control target
= control target key end

     0   :  { %11 = vsyncpa [#allocation3], 0  ;;  %s269_s0 = inlined_call_operand.hbm [shape: f32[2,4,256], index: 0, kind: input, shape index: {}]   ;;  %s270_s1 = inlined_call_operand.vmem [shape: f32[4,1], index: 1, kind: input, shape index: {}]   ;;  %s271_s2 = inlined_call_operand.vmem [shape: f32[4,1], index: 2, kind: input, shape index: {}]   ;;  %s272_s3 = inlined_call_operand.hbm [shape: f32[2,4,256], index: 3, kind: output, shape index: {0}]   ;;  %s273_s4 = inlined_call_operand.vmem [shape: f32[4,1], index: 4, kind: output, shape index: {1}]   ;;  %s274_s5 = inlined_call_operand.vmem [shape: f32[4,1], index: 5, kind: output, shape index: {2}]  }
   0x1   :  { %12 = vsyncpa [#allocation4], 0  ;;  %s197_s18 = smov [#allocation2]  }
   0x2   :  { %s18_s19 = sshll.u32 %s197_s18, 4  ;;  %s19_s19 = int_to_ptr.vmem [resolvable:$true] %s18_s19 }
   0x3   :  { %s161_s20 = scalar_lea.vmem %s19_s19, 256  ;;  %p166_p1 = scmp.lt.s32.totalorder %s19_s19, %s19_s19 }
   0x4   :  { %p162_p0 = scmp.ne.s32.totalorder %s19_s19, %s161_s20  ;;  %p167_p2 = scmp.lt.s32.totalorder %s161_s20, %s161_s20 }
   0x6   :  { %p168_p3 = por %p167_p2, %p166_p1 }
   0x8   :  { %p169_p4 = pnand %p168_p3, %p162_p0 }
   0xa   :  { %172 = shalt.err (!%p169_p4)
}
   0xb   :  { %s198_s21 = smov 128   ;;  %s199_s22 = smov 8  }
   0xc   :  { %24 = dma.hbm_to_vmem [thread:$0]  %s269_s0, 256, %s19_s19, [#allocation3], %s198_s21, %s198_s21, %s199_s22  }
   0xd   :  { %193 = dma.done.wait [#allocation3], 256  }
   0xe   :  { %194 = vsyncadd [#allocation3], 4294967040  ;;  %vm40_vm0 = vcmask 1043456   ;;  %v32_v0 = vld [vmem:[#allocation2] sm:$0xff]  ;;  %v33_v1 = vld [vmem:[#allocation2 + $0x8] sm:$0xff]  ;;  %v200_v26 = vmov 0   ;;  %v90_v43 = vlaneseq }
   0xf   :  { %v36_v2 = vcombine.high %v32_v0, %v32_v0  ;;  %v37_v3 = vcombine.high %v33_v1, %v33_v1  ;;  %v41_v4 = vsel %vm40_vm0, %v32_v0, 0.0  ;;  %v42_v5 = vsel %vm40_vm0, %v33_v1, 0.0  ;;  %147 = vset.pattern.permute.xlu1 %v200_v26  ;;  %148 = vset.pattern.permute.xlu0 %v200_v26  ;;  %v78_v35 = vld [vmem:[%s270_s1] sm:$0xf]  ;;  %s202_s1 = smov [#allocation5]  }
  0x10   :  { %v43_v6 = vadd.f32 %v42_v5, %v41_v4  ;;  %v47_v7 = vmul.f32 %v32_v0, %v32_v0  ;;  %v48_v8 = vmul.f32 %v33_v1, %v33_v1  ;;  %vm113_vm1 = vcmask 3072   ;;  %v79_v38 = vld [vmem:[%s271_s2] sm:$0xf] }
  0x11   :  { %v44_v9 = vsel %vm40_vm0, %v36_v2, 0.0  ;;  %v45_v10 = vsel %vm40_vm0, %v37_v3, 0.0  ;;  %v201_v41 = vmov 839922192   ;;  %v91_v45 = vshrl.u32 %v90_v43, 7 }
  0x12   :  { %v46_v11 = vadd.f32 %v45_v10, %v44_v9  ;;  %v61_v12 = vsel %vm40_vm0, %v43_v6, 0.0  ;;  %v51_v13 = vcombine.high %v47_v7, %v47_v7  ;;  %v52_v14 = vcombine.high %v48_v8, %v48_v8 }
  0x13   :  { %v55_v15 = vsel %vm40_vm0, %v47_v7, 0.0  ;;  %v56_v16 = vsel %vm40_vm0, %v48_v8, 0.0  ;;  %v88_v42 = vunpack.c.l.s4 %v201_v41 }
  0x14   :  { %v62_v17 = vsel %vm40_vm0, %v46_v11, 0.0  ;;  %v57_v18 = vadd.f32 %v56_v16, %v55_v15  ;;  %v58_v19 = vsel %vm40_vm0, %v51_v13, 0.0  ;;  %v59_v20 = vsel %vm40_vm0, %v52_v14, 0.0 }
  0x15   :  { %v63_v21 = vadd.f32 %v62_v17, %v61_v12  ;;  %v60_v22 = vadd.f32 %v59_v20, %v58_v19  ;;  %v89_v44 = vunpack.c.0.s8 %v88_v42 }
  0x16   :  { %v66_v23 = vsel %vm40_vm0, %v57_v18, 0.0 }
  0x17   :  { %64 = vadd.xlane.f32.xlu0 %v63_v21  ;;  %v67_v24 = vsel %vm40_vm0, %v60_v22, 0.0  ;;  %v92_v46 = vsub.s32 %v89_v44, %v91_v45 }
  0x18   :  { %v68_v25 = vadd.f32 %v67_v24, %v66_v23 }
  0x1b   :  { %69 = vadd.xlane.f32.xlu0 %v68_v25 }
  0xa0   :  { %v65_v27 = vpop.xlane.xlu0 %64 }
  0xa1   :  { %v71_v28 = vmul.f32 0.001953125, %v65_v27 }
  0xa3   :  { %v72_v29 = vmul.f32 %v71_v28, %v65_v27  ;;  %114 = vst.msk [vmem:[%s273_s4] sm:$0xf] %vm113_vm1, %v71_v28  ;;  %s121_s4 = sshll.u32 %s202_s1, 4  ;;  %s122_s4 = int_to_ptr.vmem [resolvable:$true] %s121_s4 }
  0xa4   :  { %v70_v30 = vpop.xlane.xlu0 %69  ;;  %s173_s2 = scalar_lea.vmem %s122_s4, 256  ;;  %p178_p6 = scmp.lt.s32.totalorder %s122_s4, %s122_s4 }
  0xa5   :  { %v73_v31 = vsub.f32 %v70_v30, %v72_v29  ;;  %p174_p5 = scmp.ne.s32.totalorder %s122_s4, %s173_s2  ;;  %p179_p7 = scmp.lt.s32.totalorder %s173_s2, %s173_s2 }
  0xa7   :  { %v74_v32 = vmul.f32 0.0019569471, %v73_v31  ;;  %p180_p8 = por %p179_p7, %p178_p6 }
  0xa9   :  { %v75_v33 = vmax.f32 %v74_v32, 0.0  ;;  %p181_p9 = pnand %p180_p8, %p174_p5 }
  0xab   :  { %v76_v34 = vadd.f32 1e-05, %v75_v33  ;;  %115 = vst.msk [vmem:[%s274_s5] sm:$0xf] %vm113_vm1, %v75_v33 }
  0xad   :  { %151 = vrsqrt.f32 %v76_v34 }
  0xba   :  { %v152_v36 = vpop.eup %151 }
  0xbb   :  { %v80_v37 = vmul.f32 %v152_v36, %v78_v35 }
  0xbd   :  { %85 = vperm.xlu1 %147, %v80_v37   ;;  %v81_v39 = vmul.f32 %v80_v37, %v71_v28 }
  0xbf   :  { %v82_v40 = vsub.f32 %v79_v38, %v81_v39 }
  0xc1   :  { %99 = vperm.xlu1 %147, %v82_v40  }
 0x138   :  { %v86_v47 = vpop.permute.xlu1 %85 }
 0x139   :  { %v93_v48 = vrot.slane %v86_v47, %v92_v46 }
 0x13b   :  { %v95_v50 = vmul.f32 %v93_v48, %v32_v0  ;;  %v96_v51 = vmul.f32 %v93_v48, %v33_v1 }
 0x13c   :  { %v100_v49 = vpop.permute.xlu1 %99 }
 0x13d   :  { %v107_v52 = vrot.slane %v100_v49, %v92_v46 }
 0x13f   :  { %v109_v53 = vadd.f32 %v107_v52, %v95_v50  ;;  %v110_v54 = vadd.f32 %v107_v52, %v96_v51 }
 0x141   :  { %111 = vst [vmem:[#allocation5] sm:$0xff] %v109_v53  ;;  %112 = vst [vmem:[#allocation5 + $0x8] sm:$0xff] %v110_v54 }
 0x142   :  { %184 = shalt.err (!%p181_p9)
}
 0x143   :  { %127 = dma.vmem_to_hbm [thread:$0]  %s122_s4, 256, %s272_s3, [#allocation4], %s198_s21, %s198_s21, %s199_s22  }
 0x144   :  { %195 = dma.done.wait [#allocation4], 256  }
 0x145   :  { %196 = vsyncadd [#allocation4], 4294967040 }
 0x146   :  { %139 = vsyncpa [#allocation3], 1 }
 0x147   :  { %140 = vsyncpa [#allocation4], 1 }

</bundles_post_ra>
